<compile_context>
chip_gen: v5e
topology: v5e:2x2
jax: 0.10.0
libtpu: 0.0.40
codegen_flags: <defaults>
</compile_context>

<pallas_src>
import math

import jax
import jax.numpy as jnp
from jax.experimental import pallas as pl
from jax.experimental.pallas import tpu as pltpu

_LANES = 128
_MAX_BLOCK_ROWS = 512  # 512 x 128 x 4B = 256 KiB per f32 buffer per pipeline stage


# ----------------------------------------------------------------------------
# EMA update kernel: fused over all floating params, gridded, in-place.
#   ema = rate * ema + (1 - rate) * new       (computed in f32)
# ----------------------------------------------------------------------------
def _ema_step_kernel(rate_ref, ema_ref, new_ref, out_ref):
    rate = rate_ref[0]             # scalar from SMEM
    one_minus_rate = rate_ref[1]   # precomputed (1 - rate), also SMEM
    ema = ema_ref[...].astype(jnp.float32)
    new = new_ref[...].astype(jnp.float32)
    out_ref[...] = (rate * ema + one_minus_rate * new).astype(out_ref.dtype)


def _ema_pallas(rate_arr, ema2d, new2d, block_rows):
    rows = ema2d.shape[0]
    return pl.pallas_call(
        _ema_step_kernel,
        out_shape=jax.ShapeDtypeStruct(ema2d.shape, ema2d.dtype),
        grid=(rows // block_rows,),
        in_specs=[
            pl.BlockSpec(memory_space=pltpu.MemorySpace.SMEM),       # [rate, 1-rate]
            pl.BlockSpec((block_rows, _LANES), lambda i: (i, 0)),    # ema (aliased)
            pl.BlockSpec((block_rows, _LANES), lambda i: (i, 0)),    # new params
        ],
        out_specs=pl.BlockSpec((block_rows, _LANES), lambda i: (i, 0)),
        input_output_aliases={1: 0},   # in-place update of the EMA slab (P8)
        compiler_params=pltpu.CompilerParams(
            dimension_semantics=("parallel",)),
    )(rate_arr, ema2d, new2d)


# ----------------------------------------------------------------------------
# Forward kernel of the wrapped model: tiled matmul  y = x @ W + b
# ----------------------------------------------------------------------------
def _linear_kernel(x_ref, w_ref, b_ref, o_ref, acc_ref):
    @pl.when(pl.program_id(2) == 0)
    def _():
        acc_ref[...] = jnp.zeros_like(acc_ref)

    acc_ref[...] += jnp.dot(x_ref[...], w_ref[...],
                            preferred_element_type=jnp.float32)

    @pl.when(pl.program_id(2) == pl.num_programs(2) - 1)
    def _():
        o_ref[...] = (acc_ref[...] + b_ref[...].astype(jnp.float32)
                      ).astype(o_ref.dtype)


def _pick_tile(dim, pref):
    # Use the preferred tile if it divides the dim, else fall back to the full
    # dim (allowed by the (8,128) rule; fine for small model heads).
    return pref if dim % pref == 0 else dim


def linear_forward(weight, bias, x_nchw):
    n = x_nchw.shape[0]
    x2 = x_nchw.reshape(n, -1)            # (N, F); any dtype cast happens in-kernel
    f, o = weight.shape
    assert x2.shape[1] == f
    tm = _pick_tile(n, 128)
    tn = _pick_tile(o, 128)
    tk = _pick_tile(f, 256)
    b2 = bias.reshape(1, o)
    return pl.pallas_call(
        _linear_kernel,
        out_shape=jax.ShapeDtypeStruct((n, o), jnp.float32),
        grid=(n // tm, o // tn, f // tk),
        in_specs=[
            pl.BlockSpec((tm, tk), lambda i, j, k: (i, k)),
            pl.BlockSpec((tk, tn), lambda i, j, k: (k, j)),
            pl.BlockSpec((1, tn), lambda i, j, k: (0, j)),
        ],
        out_specs=pl.BlockSpec((tm, tn), lambda i, j, k: (i, j)),
        scratch_shapes=[pltpu.VMEM((tm, tn), jnp.float32)],
        compiler_params=pltpu.CompilerParams(
            dimension_semantics=("parallel", "parallel", "arbitrary")),
    )(x2, weight, b2)


# ----------------------------------------------------------------------------
# EMA wrapper mirroring the PyTorch module semantics
# ----------------------------------------------------------------------------
class ExponentialMovingAverage:
    def __init__(self, params, decay=0.9999, tau=2000, num_steps=0):
        self.num_steps = num_steps
        self.decay = lambda x: decay * (1.0 - math.exp(-x / tau))

        # Split params into floating (EMA-tracked, packed into one flat slab)
        # and non-floating buffers (kept verbatim, skipped like in torch).
        self._float_keys = []
        self._offsets = {}
        self._shapes = {}
        self._dtypes = {}
        self._buffers = {}
        parts = []
        off = 0
        for k, v in params.items():
            v = jnp.asarray(v)
            if jnp.issubdtype(v.dtype, jnp.floating):
                self._float_keys.append(k)
                self._offsets[k] = off
                self._shapes[k] = v.shape
                self._dtypes[k] = v.dtype
                off += v.size
                parts.append(v.reshape(-1).astype(jnp.float32))
            else:
                self._buffers[k] = v
        self._numel = off

        # Lane/sublane-dense (rows, 128) layout, rows a multiple of block_rows.
        rows = -(-off // _LANES)
        if rows <= _MAX_BLOCK_ROWS:
            block_rows = max(8, ((rows + 7) // 8) * 8)
        else:
            block_rows = _MAX_BLOCK_ROWS
        padded_rows = -(-rows // block_rows) * block_rows
        self._block_rows = block_rows
        self._padded_rows = padded_rows

        flat = jnp.concatenate(parts)
        flat = jnp.pad(flat, (0, padded_rows * _LANES - off))
        self._flat = flat.reshape(padded_rows, _LANES)

        numel = self._numel

        # One jitted step: pack new params + run the fused, gridded Pallas
        # kernel; the EMA slab is donated so the update is in-place.
        def _step_fn(rate_arr, ema2d, new_leaves):
            new_flat = jnp.concatenate(
                [leaf.reshape(-1).astype(jnp.float32) for leaf in new_leaves])
            new_flat = jnp.pad(new_flat, (0, padded_rows * _LANES - numel))
            return _ema_pallas(rate_arr, ema2d,
                               new_flat.reshape(padded_rows, _LANES),
                               block_rows)

        self._step_fn = jax.jit(_step_fn, donate_argnums=(1,))

        # TODO(synk): from_checkpoint / save_checkpoint (torch.save/load) have
        # no Pallas equivalent and are intentionally omitted.

    @property
    def params(self):
        out = dict(self._buffers)
        flat = self._flat.reshape(-1)
        for k in self._float_keys:
            off = self._offsets[k]
            shp = self._shapes[k]
            n = math.prod(shp)
            out[k] = flat[off:off + n].reshape(shp).astype(self._dtypes[k])
        return out

    def forward(self, x_nchw):
        p = self.params
        return linear_forward(p["weight"], p["bias"], x_nchw)

    def step(self, new_params):
        self.num_steps += 1
        rate = self.decay(self.num_steps)
        rate_arr = jnp.asarray([rate, 1.0 - rate], dtype=jnp.float32)
        new_leaves = tuple(jnp.asarray(new_params[k]) for k in self._float_keys)
        self._flat = self._step_fn(rate_arr, self._flat, new_leaves)


# ----------------------------------------------------------------------------
# Demo / correctness check
# ----------------------------------------------------------------------------
if __name__ == "__main__":
    key = jax.random.PRNGKey(0)
    k_x, k_w, k_b, k_dw, k_db = jax.random.split(key, 5)

    N, C, H, W = 2, 4, 16, 16
    F = C * H * W                      # 1024
    O = 32

    x = jax.random.normal(k_x, (N, C, H, W), dtype=jnp.float32)

    # "live" model parameters (deterministic synthetic init)
    live = {
        "weight": jax.random.normal(k_w, (F, O), dtype=jnp.float32) * 0.02,
        "bias": jax.random.normal(k_b, (O,), dtype=jnp.float32) * 0.02,
        "num_batches_tracked": jnp.array([0], dtype=jnp.int32),  # non-float buffer
    }

    ema = ExponentialMovingAverage(live, decay=0.9999, tau=2000, num_steps=0)

    # simulate a few training steps: live params drift, EMA tracks them
    num_ema_steps = 3
    live_hist = []
    cur = dict(live)
    for s in range(num_ema_steps):
        cur = {
            "weight": cur["weight"] + 0.01 * jax.random.normal(
                jax.random.fold_in(k_dw, s), (F, O), dtype=jnp.float32),
            "bias": cur["bias"] + 0.01 * jax.random.normal(
                jax.random.fold_in(k_db, s), (O,), dtype=jnp.float32),
            "num_batches_tracked": cur["num_batches_tracked"] + 1,
        }
        live_hist.append(cur)
        ema.step(cur)

    # forward through the EMA shadow model (tiled Pallas matmul kernel)
    y = ema.forward(x)
    y = jax.block_until_ready(y)

    # ---------------- pure-JAX reference ----------------
    ref_w, ref_b = live["weight"], live["bias"]
    for s, p in enumerate(live_hist):
        rate = 0.9999 * (1.0 - math.exp(-(s + 1) / 2000))
        ref_w = rate * ref_w + (1.0 - rate) * p["weight"]
        ref_b = rate * ref_b + (1.0 - rate) * p["bias"]
    y_ref = x.reshape(N, -1) @ ref_w + ref_b[None, :]

    ema_params = ema.params
    assert y.shape == (N, O)
    assert jnp.allclose(ema_params["weight"], ref_w, atol=1e-6, rtol=1e-6)
    assert jnp.allclose(ema_params["bias"], ref_b, atol=1e-6, rtol=1e-6)
    assert jnp.allclose(y, y_ref, atol=1e-4, rtol=1e-4)
    assert ema_params["num_batches_tracked"].dtype == jnp.int32  # untouched

    print("KERNEL_OK")
</pallas_src>

<mosaic_0001>
module attributes {stable_mosaic.version = 11 : i64} {
  func.func @_ema_step_kernel(%arg0: i32, %arg1: memref<2xf32, #tpu.memory_space<smem>>, %arg2: memref<264x128xf32, #tpu.memory_space<vmem>>, %arg3: memref<264x128xf32, #tpu.memory_space<vmem>>, %arg4: memref<264x128xf32, #tpu.memory_space<vmem>>) attributes {dimension_semantics = [#tpu.dimension_semantics<parallel>], iteration_bounds = array<i64: 1>, scalar_prefetch = 0 : i64, scratch_operands = 0 : i64, tpu.core_type = #tpu.core_type<tc>, window_params = [{transform_indices = @transform_0, window_bounds = array<i64: 2>}, {transform_indices = @transform_1, window_bounds = array<i64: 264, 128>}, {transform_indices = @transform_2, window_bounds = array<i64: 264, 128>}, {transform_indices = @transform_3, window_bounds = array<i64: 264, 128>}]} {
    %c0 = arith.constant 0 : index
    %0 = memref.load %arg1[%c0] : memref<2xf32, #tpu.memory_space<smem>>
    %c1 = arith.constant 1 : index
    %1 = memref.load %arg1[%c1] : memref<2xf32, #tpu.memory_space<smem>>
    %c0_0 = arith.constant 0 : index
    %c0_1 = arith.constant 0 : index
    %2 = vector.load %arg2[%c0_0, %c0_1] : memref<264x128xf32, #tpu.memory_space<vmem>>, vector<264x128xf32>
    %c0_2 = arith.constant 0 : index
    %c0_3 = arith.constant 0 : index
    %3 = vector.load %arg3[%c0_2, %c0_3] : memref<264x128xf32, #tpu.memory_space<vmem>>, vector<264x128xf32>
    %4 = vector.broadcast %0 : f32 to vector<264x128xf32>
    %5 = arith.mulf %4, %2 : vector<264x128xf32>
    %6 = vector.broadcast %1 : f32 to vector<264x128xf32>
    %7 = arith.mulf %6, %3 : vector<264x128xf32>
    %8 = arith.addf %5, %7 : vector<264x128xf32>
    %c0_4 = arith.constant 0 : index
    %c0_5 = arith.constant 0 : index
    %9 = vector.load %arg4[%c0_4, %c0_5] : memref<264x128xf32, #tpu.memory_space<vmem>>, vector<264x128xf32>
    tpu.vector_store %arg4[%c0_4, %c0_5], %8 {strides = array<i32>} : memref<264x128xf32, #tpu.memory_space<vmem>>, vector<264x128xf32>,
    return
  }
  func.func @transform_0(%arg0: i32) -> i32 {
    %c0_i32 = arith.constant 0 : i32
    %c0_i32_0 = arith.constant 0 : i32
    return %c0_i32 : i32
  }
  func.func @transform_1(%arg0: i32) -> (i32, i32) {
    %c0_i32 = arith.constant 0 : i32
    %c0_i32_0 = arith.constant 0 : i32
    return %arg0, %c0_i32 : i32, i32
  }
  func.func @transform_2(%arg0: i32) -> (i32, i32) {
    %c0_i32 = arith.constant 0 : i32
    %c0_i32_0 = arith.constant 0 : i32
    return %arg0, %c0_i32 : i32, i32
  }
  func.func @transform_3(%arg0: i32) -> (i32, i32) {
    %c0_i32 = arith.constant 0 : i32
    %c0_i32_0 = arith.constant 0 : i32
    return %arg0, %c0_i32 : i32, i32
  }
}

</mosaic_0001>

<bundles_post_ra>
// kernel: _step_fn.1
= control target key start
LH: loop header
LB: loop body
LE: loop exit
PB: predicated region body
PF: predicated region fallthrough
CT: control target
= control target key end

     0   :  { %8 = vsyncpa [#allocation5], 0  ;;  %s547_s0 = inlined_call_operand.vmem [shape: f32[2], index: 0, kind: input, shape index: {}]   ;;  %s548_s1 = inlined_call_operand.hbm [shape: f32[264,128], index: 1, kind: input, shape index: {}, may-alias: {1,3}]   ;;  %s549_s2 = inlined_call_operand.vmem [shape: f32[264,128], index: 2, kind: input, shape index: {}]   ;;  %s550_s3 = inlined_call_operand.hbm [shape: f32[264,128], index: 3, kind: output, shape index: {}, may-alias: {1,3}]  }
   0x1   :  { %9 = vsyncpa [#allocation3], 0 }
   0x2   :  { %10 = vsyncpa [#allocation4], 0  ;;  %s16_s14 = sshll.u32 %s547_s0, 4  ;;  %s24_s17 = sshll.u32 %s548_s1, 4  ;;  %s17_s14 = int_to_ptr.vmem [resolvable:$true] %s16_s14  ;;  %s25_s17 = int_to_ptr.hbm [resolvable:$true] %s24_s17 }
   0x3   :  { %s338_s18 = smov [#allocation2]   ;;  %s339_s19 = smov [#allocation6]  }
   0x4   :  { %19 = dma.vmem_to_smem %s17_s14, 16, %s338_s18, [#allocation5]  }
   0x5   :  { %s26_s20 = sshll.u32 %s339_s19, 4  ;;  %s340_s21 = smov 128   ;;  %s27_s20 = int_to_ptr.vmem [resolvable:$true] %s26_s20 }
   0x6   :  { %s341_s22 = smov 8  }
   0x7   :  { %32 = dma.hbm_to_vmem [thread:$0]  %s25_s17, 4224, %s27_s20, [#allocation3], %s340_s21, %s340_s21, %s341_s22  }
   0x8   :  { %332 = dma.done.wait [#allocation5], 16  }
   0x9   :  { %333 = vsyncadd [#allocation5], 4294967280 }
   0xa   :  { %334 = dma.done.wait [#allocation3], 4224  }
   0xb   :  { %335 = vsyncadd [#allocation3], 4294963072 }
   0xc   :  { %43 = sfence }
   0xd   :  { %s44_s0 = sld [smem:[#allocation2]]  ;;  %v46_v0 = vld [vmem:[#allocation6] sm:$0xff]  ;;  %v47_v2 = vld [vmem:[#allocation6 + $0x8] sm:$0xff]  ;;  %v48_v4 = vld [vmem:[#allocation6 + $0x10] sm:$0xff]  ;;  %s252_s11 = sshll.u32 %s550_s3, 4  ;;  %s253_s11 = int_to_ptr.hbm [resolvable:$true] %s252_s11 }
   0xe   :  { %s266_s23 = sld [smem:[#allocation2 + $0x1]]  ;;  %v79_v1 = vld [vmem:[%s549_s2] sm:$0xff]  ;;  %v80_v3 = vld [vmem:[%s549_s2 + $0x8] sm:$0xff]  ;;  %v81_v5 = vld [vmem:[%s549_s2 + $0x10] sm:$0xff] }
   0xf   :  { %v49_v6 = vld [vmem:[#allocation6 + $0x18] sm:$0xff]  ;;  %v50_v9 = vld [vmem:[#allocation6 + $0x20] sm:$0xff]  ;;  %v51_v11 = vld [vmem:[#allocation6 + $0x28] sm:$0xff] }
  0x10   :  { %v82_v7 = vld [vmem:[%s549_s2 + $0x18] sm:$0xff]  ;;  %v83_v10 = vld [vmem:[%s549_s2 + $0x20] sm:$0xff]  ;;  %v84_v16 = vld [vmem:[%s549_s2 + $0x28] sm:$0xff] }
  0x11   :  { %v52_v21 = vld [vmem:[#allocation6 + $0x30] sm:$0xff]  ;;  %v53_v27 = vld [vmem:[#allocation6 + $0x38] sm:$0xff]  ;;  %v54_v29 = vld [vmem:[#allocation6 + $0x40] sm:$0xff] }
  0x12   :  { %v85_v22 = vld [vmem:[%s549_s2 + $0x30] sm:$0xff]  ;;  %v86_v28 = vld [vmem:[%s549_s2 + $0x38] sm:$0xff]  ;;  %v87_v34 = vld [vmem:[%s549_s2 + $0x40] sm:$0xff] }
  0x13   :  { %v384_v8 = vstv %s44_s0  ;;  %v55_v35 = vld [vmem:[#allocation6 + $0x48] sm:$0xff]  ;;  %v56_v40 = vld [vmem:[#allocation6 + $0x50] sm:$0xff]  ;;  %v57_v46 = vld [vmem:[#allocation6 + $0x58] sm:$0xff] }
  0x14   :  { %v113_v12 = vmul.f32 %v384_v8, %v46_v0  ;;  %v390_v13 = vstv %s266_s23  ;;  %v114_v14 = vmul.f32 %v384_v8, %v47_v2  ;;  %v115_v15 = vmul.f32 %v384_v8, %v48_v4  ;;  %v88_v36 = vld [vmem:[%s549_s2 + $0x48] sm:$0xff]  ;;  %v89_v41 = vld [vmem:[%s549_s2 + $0x50] sm:$0xff]  ;;  %v90_v47 = vld [vmem:[%s549_s2 + $0x58] sm:$0xff] }
  0x15   :  { %v147_v17 = vmul.f32 %v390_v13, %v79_v1  ;;  %v148_v18 = vmul.f32 %v390_v13, %v80_v3  ;;  %v149_v19 = vmul.f32 %v390_v13, %v81_v5  ;;  %v116_v20 = vmul.f32 %v384_v8, %v49_v6  ;;  %v58_v52 = vld [vmem:[#allocation6 + $0x60] sm:$0xff]  ;;  %v59_v57 = vld [vmem:[#allocation6 + $0x68] sm:$0xff]  ;;  %v60_v62 = vld [vmem:[#allocation6 + $0x70] sm:$0xff] }
  0x16   :  { %v150_v23 = vmul.f32 %v390_v13, %v82_v7  ;;  %v117_v24 = vmul.f32 %v384_v8, %v50_v9  ;;  %v151_v25 = vmul.f32 %v390_v13, %v83_v10  ;;  %v118_v26 = vmul.f32 %v384_v8, %v51_v11  ;;  %v91_v53 = vld [vmem:[%s549_s2 + $0x60] sm:$0xff]  ;;  %v92_v58 = vld [vmem:[%s549_s2 + $0x68] sm:$0xff]  ;;  %v93_v63 = vld [vmem:[%s549_s2 + $0x70] sm:$0xff] }
  0x17   :  { %v180_v30 = vadd.f32 %v147_v17, %v113_v12  ;;  %v181_v31 = vadd.f32 %v148_v18, %v114_v14  ;;  %v182_v32 = vadd.f32 %v149_v19, %v115_v15  ;;  %v152_v33 = vmul.f32 %v390_v13, %v84_v16  ;;  %v61_v3 = vld [vmem:[#allocation6 + $0x78] sm:$0xff]  ;;  %v62_v9 = vld [vmem:[#allocation6 + $0x80] sm:$0xff]  ;;  %v63_v15 = vld [vmem:[#allocation6 + $0x88] sm:$0xff] }
  0x18   :  { %v183_v37 = vadd.f32 %v150_v23, %v116_v20  ;;  %v119_v38 = vmul.f32 %v384_v8, %v52_v21  ;;  %v153_v39 = vmul.f32 %v390_v13, %v85_v22  ;;  %v184_v42 = vadd.f32 %v151_v25, %v117_v24  ;;  %v94_v4 = vld [vmem:[%s549_s2 + $0x78] sm:$0xff]  ;;  %v95_v10 = vld [vmem:[%s549_s2 + $0x80] sm:$0xff]  ;;  %v96_v16 = vld [vmem:[%s549_s2 + $0x88] sm:$0xff] }
  0x19   :  { %213 = vst [vmem:[#allocation7] sm:$0xff] %v180_v30  ;;  %v120_v43 = vmul.f32 %v384_v8, %v53_v27  ;;  %v154_v44 = vmul.f32 %v390_v13, %v86_v28  ;;  %v121_v45 = vmul.f32 %v384_v8, %v54_v29  ;;  %v185_v48 = vadd.f32 %v152_v33, %v118_v26  ;;  %v64_v20 = vld [vmem:[#allocation6 + $0x90] sm:$0xff]  ;;  %v65_v25 = vld [vmem:[#allocation6 + $0x98] sm:$0xff]  ;;  %v66_v30 = vld [vmem:[#allocation6 + $0xa0] sm:$0xff] }
  0x1a   :  { %214 = vst [vmem:[#allocation7 + $0x8] sm:$0xff] %v181_v31  ;;  %v155_v49 = vmul.f32 %v390_v13, %v87_v34  ;;  %v122_v50 = vmul.f32 %v384_v8, %v55_v35  ;;  %v156_v51 = vmul.f32 %v390_v13, %v88_v36  ;;  %v186_v54 = vadd.f32 %v153_v39, %v119_v38  ;;  %v97_v21 = vld [vmem:[%s549_s2 + $0x90] sm:$0xff]  ;;  %v98_v26 = vld [vmem:[%s549_s2 + $0x98] sm:$0xff]  ;;  %v99_v31 = vld [vmem:[%s549_s2 + $0xa0] sm:$0xff] }
  0x1b   :  { %215 = vst [vmem:[#allocation7 + $0x10] sm:$0xff] %v182_v32  ;;  %v123_v55 = vmul.f32 %v384_v8, %v56_v40  ;;  %v157_v56 = vmul.f32 %v390_v13, %v89_v41  ;;  %v187_v59 = vadd.f32 %v154_v44, %v120_v43  ;;  %v124_v60 = vmul.f32 %v384_v8, %v57_v46  ;;  %v67_v35 = vld [vmem:[#allocation6 + $0xa8] sm:$0xff]  ;;  %v68_v40 = vld [vmem:[#allocation6 + $0xb0] sm:$0xff]  ;;  %v102_v46 = vld [vmem:[%s549_s2 + $0xb8] sm:$0xff] }
  0x1c   :  { %216 = vst [vmem:[#allocation7 + $0x18] sm:$0xff] %v183_v37  ;;  %v158_v61 = vmul.f32 %v390_v13, %v90_v47  ;;  %v188_v0 = vadd.f32 %v155_v49, %v121_v45  ;;  %v125_v1 = vmul.f32 %v384_v8, %v58_v52  ;;  %v159_v2 = vmul.f32 %v390_v13, %v91_v53  ;;  %v100_v36 = vld [vmem:[%s549_s2 + $0xa8] sm:$0xff]  ;;  %v101_v41 = vld [vmem:[%s549_s2 + $0xb0] sm:$0xff]  ;;  %v69_v45 = vld [vmem:[#allocation6 + $0xb8] sm:$0xff] }
  0x1d   :  { %217 = vst [vmem:[#allocation7 + $0x20] sm:$0xff] %v184_v42  ;;  %v189_v5 = vadd.f32 %v156_v51, %v122_v50  ;;  %v126_v6 = vmul.f32 %v384_v8, %v59_v57  ;;  %v160_v7 = vmul.f32 %v390_v13, %v92_v58  ;;  %v190_v11 = vadd.f32 %v157_v56, %v123_v55  ;;  %v70_v50 = vld [vmem:[#allocation6 + $0xc0] sm:$0xff]  ;;  %v71_v55 = vld [vmem:[#allocation6 + $0xc8] sm:$0xff] }
  0x1e   :  { %218 = vst [vmem:[#allocation7 + $0x28] sm:$0xff] %v185_v48  ;;  %v127_v12 = vmul.f32 %v384_v8, %v60_v62  ;;  %v161_v14 = vmul.f32 %v390_v13, %v93_v63  ;;  %v191_v17 = vadd.f32 %v158_v61, %v124_v60  ;;  %v128_v18 = vmul.f32 %v384_v8, %v61_v3  ;;  %v103_v51 = vld [vmem:[%s549_s2 + $0xc0] sm:$0xff]  ;;  %v104_v56 = vld [vmem:[%s549_s2 + $0xc8] sm:$0xff]  ;;  %v72_v60 = vld [vmem:[#allocation6 + $0xd0] sm:$0xff] }
  0x1f   :  { %219 = vst [vmem:[#allocation7 + $0x30] sm:$0xff] %v186_v54  ;;  %v162_v19 = vmul.f32 %v390_v13, %v94_v4  ;;  %v192_v22 = vadd.f32 %v159_v2, %v125_v1  ;;  %v129_v23 = vmul.f32 %v384_v8, %v62_v9  ;;  %v163_v24 = vmul.f32 %v390_v13, %v95_v10  ;;  %v105_v61 = vld [vmem:[%s549_s2 + $0xd0] sm:$0xff]  ;;  %v73_v1 = vld [vmem:[#allocation6 + $0xd8] sm:$0xff] }
  0x20   :  { %220 = vst [vmem:[#allocation7 + $0x38] sm:$0xff] %v187_v59  ;;  %v193_v27 = vadd.f32 %v160_v7, %v126_v6  ;;  %v130_v28 = vmul.f32 %v384_v8, %v63_v15  ;;  %v164_v29 = vmul.f32 %v390_v13, %v96_v16  ;;  %v194_v32 = vadd.f32 %v161_v14, %v127_v12  ;;  %v106_v2 = vld [vmem:[%s549_s2 + $0xd8] sm:$0xff]  ;;  %v74_v6 = vld [vmem:[#allocation6 + $0xe0] sm:$0xff]  ;;  %v75_v12 = vld [vmem:[#allocation6 + $0xe8] sm:$0xff] }
  0x21   :  { %221 = vst [vmem:[#allocation7 + $0x40] sm:$0xff] %v188_v0  ;;  %v131_v33 = vmul.f32 %v384_v8, %v64_v20  ;;  %v165_v34 = vmul.f32 %v390_v13, %v97_v21  ;;  %v195_v37 = vadd.f32 %v162_v19, %v128_v18  ;;  %v132_v38 = vmul.f32 %v384_v8, %v65_v25  ;;  %v107_v7 = vld [vmem:[%s549_s2 + $0xe0] sm:$0xff]  ;;  %v108_v14 = vld [vmem:[%s549_s2 + $0xe8] sm:$0xff]  ;;  %v76_v18 = vld [vmem:[#allocation6 + $0xf0] sm:$0xff] }
  0x22   :  { %222 = vst [vmem:[#allocation7 + $0x48] sm:$0xff] %v189_v5  ;;  %v166_v39 = vmul.f32 %v390_v13, %v98_v26  ;;  %v196_v42 = vadd.f32 %v163_v24, %v129_v23  ;;  %v133_v43 = vmul.f32 %v384_v8, %v66_v30  ;;  %v167_v44 = vmul.f32 %v390_v13, %v99_v31  ;;  %v109_v19 = vld [vmem:[%s549_s2 + $0xf0] sm:$0xff]  ;;  %v77_v23 = vld [vmem:[#allocation6 + $0xf8] sm:$0xff] }
  0x23   :  { %223 = vst [vmem:[#allocation7 + $0x50] sm:$0xff] %v190_v11  ;;  %v197_v47 = vadd.f32 %v164_v29, %v130_v28  ;;  %v134_v48 = vmul.f32 %v384_v8, %v67_v35  ;;  %v168_v49 = vmul.f32 %v390_v13, %v100_v36  ;;  %v198_v52 = vadd.f32 %v165_v34, %v131_v33  ;;  %v110_v24 = vld [vmem:[%s549_s2 + $0xf8] sm:$0xff]  ;;  %v78_v28 = vld [vmem:[#allocation6 + $0x100] sm:$0xff] }
  0x24   :  { %224 = vst [vmem:[#allocation7 + $0x58] sm:$0xff] %v191_v17  ;;  %v135_v53 = vmul.f32 %v384_v8, %v68_v40  ;;  %v169_v54 = vmul.f32 %v390_v13, %v101_v41  ;;  %v199_v57 = vadd.f32 %v166_v39, %v132_v38  ;;  %v136_v58 = vmul.f32 %v384_v8, %v69_v45  ;;  %v111_v29 = vld [vmem:[%s549_s2 + $0x100] sm:$0xff]  ;;  %s342_s2 = smov [#allocation7]  }
  0x25   :  { %225 = vst [vmem:[#allocation7 + $0x60] sm:$0xff] %v192_v22  ;;  %v170_v59 = vmul.f32 %v390_v13, %v102_v46  ;;  %v200_v62 = vadd.f32 %v167_v44, %v133_v43  ;;  %v137_v63 = vmul.f32 %v384_v8, %v70_v50  ;;  %v171_v0 = vmul.f32 %v390_v13, %v103_v51  ;;  %s250_s8 = sshll.u32 %s342_s2, 4  ;;  %s251_s8 = int_to_ptr.vmem [resolvable:$true] %s250_s8 }
  0x26   :  { %226 = vst [vmem:[#allocation7 + $0x68] sm:$0xff] %v193_v27  ;;  %v201_v3 = vadd.f32 %v168_v49, %v134_v48  ;;  %v138_v4 = vmul.f32 %v384_v8, %v71_v55  ;;  %v172_v5 = vmul.f32 %v390_v13, %v104_v56  ;;  %v202_v9 = vadd.f32 %v169_v54, %v135_v53 }
  0x27   :  { %227 = vst [vmem:[#allocation7 + $0x70] sm:$0xff] %v194_v32  ;;  %v139_v10 = vmul.f32 %v384_v8, %v72_v60  ;;  %v173_v11 = vmul.f32 %v390_v13, %v105_v61  ;;  %v203_v15 = vadd.f32 %v170_v59, %v136_v58  ;;  %v140_v16 = vmul.f32 %v384_v8, %v73_v1 }
  0x28   :  { %228 = vst [vmem:[#allocation7 + $0x78] sm:$0xff] %v195_v37  ;;  %v174_v17 = vmul.f32 %v390_v13, %v106_v2  ;;  %v204_v20 = vadd.f32 %v171_v0, %v137_v63  ;;  %v141_v21 = vmul.f32 %v384_v8, %v74_v6  ;;  %v175_v22 = vmul.f32 %v390_v13, %v107_v7 }
  0x29   :  { %229 = vst [vmem:[#allocation7 + $0x80] sm:$0xff] %v196_v42  ;;  %v205_v25 = vadd.f32 %v172_v5, %v138_v4  ;;  %v142_v26 = vmul.f32 %v384_v8, %v75_v12  ;;  %v176_v27 = vmul.f32 %v390_v13, %v108_v14  ;;  %v206_v30 = vadd.f32 %v173_v11, %v139_v10 }
  0x2a   :  { %230 = vst [vmem:[#allocation7 + $0x88] sm:$0xff] %v197_v47  ;;  %v143_v31 = vmul.f32 %v384_v8, %v76_v18  ;;  %v177_v32 = vmul.f32 %v390_v13, %v109_v19  ;;  %v207_v33 = vadd.f32 %v174_v17, %v140_v16  ;;  %v144_v34 = vmul.f32 %v384_v8, %v77_v23 }
  0x2b   :  { %231 = vst [vmem:[#allocation7 + $0x90] sm:$0xff] %v198_v52  ;;  %v178_v35 = vmul.f32 %v390_v13, %v110_v24  ;;  %v208_v36 = vadd.f32 %v175_v22, %v141_v21  ;;  %v145_v37 = vmul.f32 %v384_v8, %v78_v28  ;;  %v179_v38 = vmul.f32 %v390_v13, %v111_v29 }
  0x2c   :  { %232 = vst [vmem:[#allocation7 + $0x98] sm:$0xff] %v199_v57  ;;  %v209_v39 = vadd.f32 %v176_v27, %v142_v26  ;;  %v210_v40 = vadd.f32 %v177_v32, %v143_v31 }
  0x2d   :  { %233 = vst [vmem:[#allocation7 + $0xa0] sm:$0xff] %v200_v62  ;;  %v211_v41 = vadd.f32 %v178_v35, %v144_v34  ;;  %v212_v42 = vadd.f32 %v179_v38, %v145_v37 }
  0x2e   :  { %234 = vst [vmem:[#allocation7 + $0xa8] sm:$0xff] %v201_v3 }
  0x2f   :  { %235 = vst [vmem:[#allocation7 + $0xb0] sm:$0xff] %v202_v9 }
  0x30   :  { %236 = vst [vmem:[#allocation7 + $0xb8] sm:$0xff] %v203_v15 }
  0x31   :  { %237 = vst [vmem:[#allocation7 + $0xc0] sm:$0xff] %v204_v20 }
  0x32   :  { %238 = vst [vmem:[#allocation7 + $0xc8] sm:$0xff] %v205_v25 }
  0x33   :  { %239 = vst [vmem:[#allocation7 + $0xd0] sm:$0xff] %v206_v30 }
  0x34   :  { %240 = vst [vmem:[#allocation7 + $0xd8] sm:$0xff] %v207_v33 }
  0x35   :  { %241 = vst [vmem:[#allocation7 + $0xe0] sm:$0xff] %v208_v36 }
  0x36   :  { %242 = vst [vmem:[#allocation7 + $0xe8] sm:$0xff] %v209_v39 }
  0x37   :  { %243 = vst [vmem:[#allocation7 + $0xf0] sm:$0xff] %v210_v40 }
  0x38   :  { %244 = vst [vmem:[#allocation7 + $0xf8] sm:$0xff] %v211_v41 }
  0x39   :  { %245 = vst [vmem:[#allocation7 + $0x100] sm:$0xff] %v212_v42 }
  0x3a   :  { %258 = dma.vmem_to_hbm [thread:$0]  %s251_s8, 4224, %s253_s11, [#allocation4], %s340_s21, %s340_s21, %s341_s22  }
  0x3b   :  { %336 = dma.done.wait [#allocation4], 4224  }
  0x3c   :  { %337 = vsyncadd [#allocation4], 4294963072 }
  0x3d   :  { %263 = vsyncpa [#allocation3], 1 }
  0x3e   :  { %264 = vsyncpa [#allocation4], 1 }
  0x3f   :  { %265 = vsyncpa [#allocation5], 1 }

</bundles_post_ra>
